<compile_context>
chip_gen: v7x
topology: tpu7x:2x2x1
jax: 0.10.0
libtpu: 0.0.40
codegen_flags: <defaults>
</compile_context>

<pallas_src>
import functools
import math

import jax
import jax.numpy as jnp
from jax import lax
from jax.experimental import pallas as pl
from jax.experimental.pallas import tpu as pltpu


def _round_up(x: int, m: int) -> int:
    return (x + m - 1) // m * m


def _vmem_budget_bytes() -> int:
    """~85% of this generation's per-core VMEM (leave compiler headroom)."""
    try:
        cap = int(pltpu.get_tpu_info().vmem_capacity_bytes)
    except Exception:        # unknown generation / older jax: assume smallest (v7x)
        cap = 64 << 20
    return max(min(int(cap * 0.85), 120 << 20), 32 << 20)


def _pass2_vmem_bytes(n, d, tm, itemsize):
    """Rough pass-2 footprint: resident keys + f32 tile temporaries."""
    k = max(1, min(512 // tm, (n + tm - 1) // tm))
    np_rows = _round_up(n, tm * k)
    keys = 2 * np_rows * d * itemsize * 2          # resident keys (allow 2 bufs)
    tiles = 5 * tm * (2 * np_rows) * 4             # sim / exp / mask f32 temporaries
    return keys + tiles + (2 << 20)


# ---------------------------------------------------------------------------
# Pass 1: normalize + sqrt(1/T) scale + concat the two views into (2*Np, d).
# ---------------------------------------------------------------------------
def _normalize_concat_kernel(z1_ref, z2_ref, o_ref, *, tm1, n_valid, scale,
                             out_dtype, mask_rows):
    h = pl.program_id(0)          # which view feeds this output block
    j = pl.program_id(1)          # row-block index inside that view

    def emit(x_ref):
        x = x_ref[...].astype(jnp.float32)                        # (tm1, d)
        ssq = jnp.sum(x * x, axis=1, keepdims=True)               # (tm1, 1)
        # F.normalize: x / max(||x||, 1e-12) == x * rsqrt(max(||x||^2, 1e-24)).
        # sqrt(1/T) folded in here so pass 2 needs no per-step scaling/casts.
        inv = lax.rsqrt(jnp.maximum(ssq, 1e-24)) * scale          # EUP
        y = x * inv
        if mask_rows:
            # Padded / overrun rows -> exact zeros (pass 2 removes their key
            # columns analytically, exactly).
            r = j * tm1 + lax.broadcasted_iota(jnp.int32, (tm1, 1), 0)
            y = jnp.where(r < n_valid, y, 0.0)
        o_ref[...] = y.astype(out_dtype)

    @pl.when(h == 0)
    def _():
        emit(z1_ref)

    @pl.when(h == 1)
    def _():
        emit(z2_ref)


def _normalize_concat(z1, z2, *, tm1, np_rows, scale, out_dtype, vmem_limit):
    n, d = z1.shape
    g1 = np_rows // tm1
    kernel = functools.partial(
        _normalize_concat_kernel, tm1=tm1, n_valid=n, scale=scale,
        out_dtype=out_dtype, mask_rows=(n % tm1 != 0))
    # Block-index "hold" trick: while h==0 the z2 spec sits on block 0 and
    # while h==1 the z1 spec sits on its last block, so Pallas skips the
    # redundant re-fetches and each input is streamed from HBM ~once.
    return pl.pallas_call(
        kernel,
        grid=(2, g1),
        in_specs=[
            pl.BlockSpec((tm1, d), lambda h, j: (j * (1 - h) + (g1 - 1) * h, 0)),
            pl.BlockSpec((tm1, d), lambda h, j: (j * h, 0)),
        ],
        out_specs=pl.BlockSpec((tm1, d), lambda h, j: (h * g1 + j, 0)),
        out_shape=jax.ShapeDtypeStruct((2 * np_rows, d), out_dtype),
        compiler_params=pltpu.CompilerParams(
            dimension_semantics=("parallel", "arbitrary"),
            vmem_limit_bytes=vmem_limit),
    )(z1, z2)


# ---------------------------------------------------------------------------
# Pass 2: row-tiled NT-Xent partials against the resident concatenated keys.
# ---------------------------------------------------------------------------
def _ntxent_tile_kernel(zc_ref, out_ref, *, tm, np_rows, n_valid, n_pad_keys,
                        exact_self_mask):
    h = pl.program_id(0)                       # view the query rows come from
    j = pl.program_id(1)                       # row-block index inside that view

    row0 = h * np_rows + j * tm                # query rows (concat indexing)
    prow0 = (1 - h) * np_rows + j * tm         # positive partners (other view)

    q = zc_ref[pl.ds(pl.multiple_of(row0, tm), tm), :]     # (tm, d), * sqrt(1/T)
    p = zc_ref[pl.ds(pl.multiple_of(prow0, tm), tm), :]
    qf = q.astype(jnp.float32)
    pf = p.astype(jnp.float32)

    # One (tm, 2*Np) similarity tile vs the resident keys; contraction on dim 1
    # of both operands (q @ keys.T), the standard attention form on the MXU.
    s = lax.dot_general(q, zc_ref[...], (((1,), (1,)), ((), ())),
                        preferred_element_type=jnp.float32)

    local = lax.broadcasted_iota(jnp.int32, (tm, 1), 0)

    if exact_self_mask:
        # Exact self-column removal (for extreme temperatures where analytic
        # cancellation would lose precision).
        cidx = lax.broadcasted_iota(jnp.int32, (tm, 2 * np_rows), 1)
        s = jnp.where(cidx == row0 + local, jnp.float32(-1e30), s)
        rowmax = jnp.max(s, axis=1, keepdims=True)
        sum_neg = jnp.sum(jnp.exp(s - rowmax), axis=1, keepdims=True)
    else:
        # Analytic removal: the self column equals the row-wise ||q||^2 built
        # from the very same operand values the MXU consumed (f32 accumulate),
        # so subtracting its exp is accurate to accumulation-order noise.
        rowmax = jnp.max(s, axis=1, keepdims=True)
        sum_all = jnp.sum(jnp.exp(s - rowmax), axis=1, keepdims=True)
        diag = jnp.sum(qf * qf, axis=1, keepdims=True)
        sum_neg = sum_all - jnp.exp(diag - rowmax)
    if n_pad_keys:
        # Zero-padded key rows contribute exactly exp(0 - rowmax) each.
        sum_neg = sum_neg - jnp.float32(n_pad_keys) * jnp.exp(-rowmax)
    lse = rowmax + jnp.log(jnp.maximum(sum_neg, jnp.float32(1e-30)))

    # Positive pair: row-wise dot with the opposite view (1/T already folded).
    pos = jnp.sum(qf * pf, axis=1, keepdims=True)

    # Padded query rows contribute exact zeros; the wrapper just sums.
    valid = (j * tm + local) < n_valid
    out_ref[...] = jnp.where(valid, lse - pos, 0.0)
    # TODO(synk): lane-dense (1, tm) output blocks would replace the masked
    # single-lane stores, but need a sublane->lane relayout; output volume is
    # only 2N*4 bytes so this is deferred.


def _pass2_call(zc, *, tm, n, vmem_limit, exact_self_mask, single_buffer):
    two_np, d = zc.shape
    np_rows = two_np // 2
    g = np_rows // tm
    kernel = functools.partial(
        _ntxent_tile_kernel, tm=tm, np_rows=np_rows, n_valid=n,
        n_pad_keys=2 * (np_rows - n), exact_self_mask=exact_self_mask)
    # The resident keys never change block index -> single-buffer them to
    # halve their VMEM footprint (decisive on v7x's 64 MiB/TC).
    key_kwargs = dict(pipeline_mode=pl.Buffered(1)) if single_buffer else {}
    return pl.pallas_call(
        kernel,
        grid=(2, g),
        in_specs=[pl.BlockSpec((two_np, d), lambda h, j: (0, 0), **key_kwargs)],
        out_specs=pl.BlockSpec((tm, 1), lambda h, j: (h * g + j, 0)),
        out_shape=jax.ShapeDtypeStruct((two_np, 1), jnp.float32),
        compiler_params=pltpu.CompilerParams(
            dimension_semantics=("parallel", "parallel"),
            vmem_limit_bytes=vmem_limit),
    )(zc)


# ---------------------------------------------------------------------------
# Wrapper (forward of NTXentLoss).
# ---------------------------------------------------------------------------
def ntxent_loss(z1, z2, temperature=0.5, *, matmul_dtype=jnp.bfloat16,
                block_rows=None, exact_self_mask=None):
    assert z1.shape == z2.shape and z1.ndim == 2
    n, d = z1.shape
    itemsize = jnp.dtype(matmul_dtype).itemsize
    budget = _vmem_budget_bytes()

    # Pass-2 query-row block: 256 rows where the f32 (tm, 2*Np) temporaries
    # fit, 128 (MXU-native) when VMEM-limited; tiny batches round up to 8.
    if block_rows is not None:
        tm = max(8, _round_up(min(block_rows, n), 8))
    else:
        tm = min(256, max(8, _round_up(n, 8)))
        while tm > 128 and _pass2_vmem_bytes(n, d, tm, itemsize) > budget:
            tm //= 2
    # TODO(synk): for very large 2N (resident keys + f32 sim tile past the
    # VMEM budget even at tm=128, esp. v7x), switch pass 2 to a streamed key
    # axis with an online-logsumexp accumulator (flash-style).

    # Pass-1 row tile: decoupled from tm (HBM-bound pass wants ~512 rows) but
    # kept a multiple of tm so the padded row count serves both passes.
    k = max(1, min(512 // tm, (n + tm - 1) // tm))
    while k > 1 and (tm * k) * d * 24 > budget:
        k //= 2
    tm1 = tm * k
    np_rows = _round_up(n, tm1)                  # padded rows per view

    scale = float(1.0 / math.sqrt(temperature))  # sqrt(1/T): sim comes out /T
    if exact_self_mask is None:
        exact_self_mask = temperature < 0.05     # analytic removal is exact
                                                 # enough for normal T

    # Pass 1: normalized, sqrt(1/T)-scaled, concatenated (2*Np, d) keys.
    zc = _normalize_concat(z1, z2, tm1=tm1, np_rows=np_rows, scale=scale,
                           out_dtype=matmul_dtype, vmem_limit=budget)

    kwargs = dict(tm=tm, n=n, vmem_limit=budget, exact_self_mask=exact_self_mask)
    try:
        partials = jax.block_until_ready(_pass2_call(zc, single_buffer=True, **kwargs))
    except Exception:
        # pl.Buffered(1) unavailable on this jax build: fall back to the
        # default double-buffered resident keys (same result, 2x key VMEM).
        partials = _pass2_call(zc, single_buffer=False, **kwargs)

    # Tiny final reduction (padded rows contributed exact zeros).
    return jnp.sum(partials) / jnp.float32(2 * n)


def _reference(z1, z2, temperature=0.5):
    """Pure-JAX reference mirroring the PyTorch forward."""
    n = z1.shape[0]
    z = jnp.concatenate([z1, z2], axis=0)
    z = z / jnp.maximum(jnp.linalg.norm(z, axis=1, keepdims=True), 1e-12)
    sim = (z @ z.T) / temperature
    m = 2 * n
    pos = jnp.concatenate([jnp.diagonal(sim, offset=n), jnp.diagonal(sim, offset=-n)])
    neg = jnp.where(jnp.eye(m, dtype=bool), -jnp.inf, sim)
    lse = jax.scipy.special.logsumexp(neg, axis=1)
    return -(pos - lse).mean()


if __name__ == "__main__":
    key = jax.random.PRNGKey(0)
    k1, k2 = jax.random.split(key)
    N, D = 8, 32                      # small synthetic shapes: batch=8, hidden=32
    z1 = jax.random.normal(k1, (N, D), dtype=jnp.float32)
    z2 = jax.random.normal(k2, (N, D), dtype=jnp.float32)

    ref = _reference(z1, z2, temperature=0.5)

    # f32 MXU path: tight check of the algorithm against the reference.
    loss_f32 = ntxent_loss(z1, z2, temperature=0.5, matmul_dtype=jnp.float32)
    jax.block_until_ready(loss_f32)
    assert jnp.allclose(loss_f32, ref, atol=1e-4, rtol=1e-4), (loss_f32, ref)

    # bf16 MXU path (default, fast): looser tolerance for bf16 operand rounding.
    loss = ntxent_loss(z1, z2, temperature=0.5)
    jax.block_until_ready(loss)
    assert jnp.allclose(loss, ref, atol=5e-3, rtol=5e-3), (loss, ref)

    print("KERNEL_OK")
</pallas_src>

<mosaic_0001>
module attributes {stable_mosaic.version = 11 : i64} {
  func.func @_normalize_concat_kernel(%arg0: i32, %arg1: i32, %arg2: memref<8x32xf32, #tpu.memory_space<vmem>>, %arg3: memref<8x32xf32, #tpu.memory_space<vmem>>, %arg4: memref<8x32xf32, #tpu.memory_space<vmem>>) attributes {dimension_semantics = [#tpu.dimension_semantics<parallel>, #tpu.dimension_semantics<arbitrary>], iteration_bounds = array<i64: 2, 1>, scalar_prefetch = 0 : i64, scratch_operands = 0 : i64, tpu.core_type = #tpu.core_type<tc>, window_params = [{transform_indices = @transform_0, window_bounds = array<i64: 8, 32>}, {transform_indices = @transform_1, window_bounds = array<i64: 8, 32>}, {transform_indices = @transform_2, window_bounds = array<i64: 8, 32>}]} {
    %c0_i32 = arith.constant 0 : i32
    %0 = arith.cmpi eq, %arg0, %c0_i32 : i32
    %1 = arith.extui %0 : i1 to i32
    %c0_i32_0 = arith.constant 0 : i32
    %2 = arith.cmpi ne, %1, %c0_i32_0 : i32
    scf.if %2 {
      %c0 = arith.constant 0 : index
      %c0_2 = arith.constant 0 : index
      %6 = vector.load %arg2[%c0, %c0_2] : memref<8x32xf32, #tpu.memory_space<vmem>>, vector<8x32xf32>
      %7 = arith.mulf %6, %6 : vector<8x32xf32>
      %cst = arith.constant dense<0.000000e+00> : vector<8xf32>
      %8 = vector.multi_reduction <add>, %7, %cst [1] : vector<8x32xf32> to vector<8xf32>
      %9 = vector.shape_cast %8 : vector<8xf32> to vector<8x1xf32>
      %cst_3 = arith.constant 1.000000e-24 : f32
      %10 = vector.broadcast %cst_3 : f32 to vector<8x1xf32>
      %11 = arith.maximumf %9, %10 : vector<8x1xf32>
      %12 = math.rsqrt %11 : vector<8x1xf32>
      %cst_4 = arith.constant 1.41421354 : f32
      %13 = vector.broadcast %cst_4 : f32 to vector<8x1xf32>
      %14 = arith.mulf %12, %13 : vector<8x1xf32>
      %15 = vector.broadcast %14 : vector<8x1xf32> to vector<8x32xf32>
      %16 = arith.mulf %6, %15 : vector<8x32xf32>
      %c0_5 = arith.constant 0 : index
      %c0_6 = arith.constant 0 : index
      %17 = vector.load %arg4[%c0_5, %c0_6] : memref<8x32xf32, #tpu.memory_space<vmem>>, vector<8x32xf32>
      tpu.vector_store %arg4[%c0_5, %c0_6], %16 {strides = array<i32>} : memref<8x32xf32, #tpu.memory_space<vmem>>, vector<8x32xf32>,
    } else {
    }
    %c1_i32 = arith.constant 1 : i32
    %3 = arith.cmpi eq, %arg0, %c1_i32 : i32
    %4 = arith.extui %3 : i1 to i32
    %c0_i32_1 = arith.constant 0 : i32
    %5 = arith.cmpi ne, %4, %c0_i32_1 : i32
    scf.if %5 {
      %c0 = arith.constant 0 : index
      %c0_2 = arith.constant 0 : index
      %6 = vector.load %arg3[%c0, %c0_2] : memref<8x32xf32, #tpu.memory_space<vmem>>, vector<8x32xf32>
      %7 = arith.mulf %6, %6 : vector<8x32xf32>
      %cst = arith.constant dense<0.000000e+00> : vector<8xf32>
      %8 = vector.multi_reduction <add>, %7, %cst [1] : vector<8x32xf32> to vector<8xf32>
      %9 = vector.shape_cast %8 : vector<8xf32> to vector<8x1xf32>
      %cst_3 = arith.constant 1.000000e-24 : f32
      %10 = vector.broadcast %cst_3 : f32 to vector<8x1xf32>
      %11 = arith.maximumf %9, %10 : vector<8x1xf32>
      %12 = math.rsqrt %11 : vector<8x1xf32>
      %cst_4 = arith.constant 1.41421354 : f32
      %13 = vector.broadcast %cst_4 : f32 to vector<8x1xf32>
      %14 = arith.mulf %12, %13 : vector<8x1xf32>
      %15 = vector.broadcast %14 : vector<8x1xf32> to vector<8x32xf32>
      %16 = arith.mulf %6, %15 : vector<8x32xf32>
      %c0_5 = arith.constant 0 : index
      %c0_6 = arith.constant 0 : index
      %17 = vector.load %arg4[%c0_5, %c0_6] : memref<8x32xf32, #tpu.memory_space<vmem>>, vector<8x32xf32>
      tpu.vector_store %arg4[%c0_5, %c0_6], %16 {strides = array<i32>} : memref<8x32xf32, #tpu.memory_space<vmem>>, vector<8x32xf32>,
    } else {
    }
    return
  }
  func.func @transform_0(%arg0: i32, %arg1: i32) -> (i32, i32) {
    %c1_i32 = arith.constant 1 : i32
    %0 = arith.subi %c1_i32, %arg0 : i32
    %1 = arith.muli %arg1, %0 : i32
    %c0_i32 = arith.constant 0 : i32
    %2 = arith.muli %c0_i32, %arg0 : i32
    %3 = arith.addi %1, %2 : i32
    %c0_i32_0 = arith.constant 0 : i32
    %c0_i32_1 = arith.constant 0 : i32
    return %3, %c0_i32_0 : i32, i32
  }
  func.func @transform_1(%arg0: i32, %arg1: i32) -> (i32, i32) {
    %0 = arith.muli %arg1, %arg0 : i32
    %c0_i32 = arith.constant 0 : i32
    %c0_i32_0 = arith.constant 0 : i32
    return %0, %c0_i32 : i32, i32
  }
  func.func @transform_2(%arg0: i32, %arg1: i32) -> (i32, i32) {
    %c1_i32 = arith.constant 1 : i32
    %0 = arith.muli %arg0, %c1_i32 : i32
    %1 = arith.addi %0, %arg1 : i32
    %c0_i32 = arith.constant 0 : i32
    %c0_i32_0 = arith.constant 0 : i32
    return %1, %c0_i32 : i32, i32
  }
}

</mosaic_0001>

<bundles_post_ra>
// kernel: tpu_custom_call.1
= control target key start
LH: loop header
LB: loop body
LE: loop exit
PB: predicated region body
PF: predicated region fallthrough
CT: control target
= control target key end

     0   :  { %7 = vsyncpa [#allocation3], 0  ;;  %s805_s0 = inlined_call_operand.hbm [shape: f32[8,32], index: 0, kind: input, shape index: {}]   ;;  %s806_s1 = inlined_call_operand.hbm [shape: f32[8,32], index: 1, kind: input, shape index: {}]   ;;  %s807_s2 = inlined_call_operand.hbm [shape: f32[16,32], index: 2, kind: output, shape index: {}]  }
   0x1   :  { %9 = vsyncpa [#allocation3 + $0x1], 0 }
   0x2   :  { %10 = vsyncpa [#allocation6], 0 }
   0x3   :  { %12 = vsyncpa [#allocation6 + $0x1], 0 }
   0x4   :  { %13 = vsyncpa [#allocation4], 0 }
   0x5   :  { %15 = vsyncpa [#allocation4 + $0x1], 0  ;;  %s629_s9 = smov 0   ;;  %s631_s10 = smov 0  }
   0x6   :  { %s633_s11 = smov 0   ;;  %s635_s12 = smov 0  }
   0x7   :  { %s637_s13 = smov 0   ;;  %s639_s14 = smov 0  }
   0x8 LB: > { %s370_s15 = sadd.s32 4294967295, %s609_s14   ;;  %s371_s16 = sadd.s32 4294967294, %s609_s14   ;;  %s609_s14 = sphi %s639_s14, %s21_s14   ;;  %s605_s13 = sphi %s637_s13, %s823_s13   ;;  %s601_s12 = sphi %s635_s12, %s822_s12   ;;  %s597_s11 = sphi %s633_s11, %s821_s11   ;;  %s593_s10 = sphi %s631_s10, %s820_s10   ;;  %s589_s9 = sphi %s629_s9, %s819_s9  }
   0x9   : > { %s33_s17 = sadd.s32 1, %s605_s13  ;;  %s100_s18 = sadd.s32 1, %s597_s11 }
   0xa   : > { %p35_p0 = scmp.ge.s32.totalorder %s33_s17, 2  ;;  %p110_p1 = scmp.ne.s32.totalorder %s597_s11, %s593_s10 }
   0xb   : > { %p111_p2 = scmp.eq.s32.totalorder %s370_s15, 1  ;;  %p116_p3 = scmp.ne.s32.totalorder %s593_s10, %s589_s9 }
   0xc   : > { %s825_s17 = smov (%p35_p0, %s33_s17), 0  ;;  %p117_p5 = scmp.eq.s32.totalorder %s371_s16, 1 }
   0xd   : > { %p671_p4 = por %p111_p2, %p110_p1  ;;  %s97_s20 = ssub.s32 %s605_s13, %s825_s17 }
   0xe   : > { %p98_p7 = scmp.eq.s32.totalorder %s97_s20, 0  ;;  %p678_p8 = por %p117_p5, %p116_p3 }
   0xf   : > { %s809_s19 = scalar_select %p671_p4, 1, 0 }
  0x10   : > { %s810_s21 = scalar_select %p678_p8, 1, 0 }
  0x11   : > { %p407_p9 = scmp.lt.s32.totalorder %s609_s14, 2  ;;  %p408_p10 = scmp.eq.s32.totalorder %s609_s14, 0 }
  0x12   : > { %s684_s22 = scalar_select %p98_p7, %s597_s11, %s100_s18  }
  0x13   : > { %s611_s23 = smov [#allocation2]   ;;  %p688_p12 = pnand %p408_p10, %p407_p9 }
  0x14   : > { %s150_s24 = sshll.u32 %s611_s23, 4  ;;  %s612_s26 = smov [#allocation5]   ;;  %s151_s24 = int_to_ptr.vmem [resolvable:$true] %s150_s24 }
  0x15   : > { %s169_s27 = sshll.u32 %s612_s26, 4  ;;  %s467_s30 = scalar_lea.hbm %s805_s0, 128  ;;  %s170_s27 = int_to_ptr.vmem [resolvable:$true] %s169_s27 }
  0x16   : > { %p468_p0 = scmp.ne.s32.totalorder %s805_s0, %s467_s30  ;;  %p469_p1 = pneg %p688_p12 }
  0x17   : > { %p474_p5 = scmp.lt.u32.totalorder %s467_s30, %s805_s0 }
  0x18   : > { %p470_p2 = pnand %p469_p1, %p468_p0 }
  0x1a   : > { %p471_p3 = pneg %p470_p2 }
  0x1c   : > { %p476_p7 = pnand %p474_p5, %p471_p3 }
  0x1e   : > { %479 = shalt.err (!%p476_p7)
}
  0x1f   : > { %s480_s7 = scalar_lea.vmem %s151_s24, 128  ;;  %s487_s8 = scalar_lea.vmem %s151_s24, 256 }
  0x20   : > { %p481_p9 = scmp.ne.s32.totalorder %s151_s24, %s480_s7  ;;  %p488_p11 = scmp.lt.s32.totalorder %s151_s24, %s151_s24 }
  0x21   : > { %p489_p13 = scmp.lt.s32.totalorder %s487_s8, %s480_s7 }
  0x22   : > { %p483_p10 = pnand %p481_p9, %p469_p1 }
  0x23   : > { %p490_p8 = por %p489_p13, %p488_p11 }
  0x24   : > { %p484_p6 = pneg %p483_p10 }
  0x26   : > { %p491_p4 = pnand %p490_p8, %p484_p6 }
  0x28   : > { %494 = shalt.err (!%p491_p4)
}
  0x29   : > { %399 = dma.hbm_to_vmem [thread:$0]  (!%p688_p12), %s805_s0, 128, %s151_s24, [#allocation3]  }
  0x2a   : > { %p812_p0 = scmp.lt.s32.totalorder %s609_s14, 3  ;;  %p813_p2 = scmp.ge.s32.totalorder %s609_s14, 1 }
  0x2b   : > { %s495_s28 = scalar_lea.hbm %s806_s1, 128 }
  0x2c   : > { %p719_p3 = pnand %p813_p2, %p812_p0  ;;  %p496_p4 = scmp.ne.s32.totalorder %s806_s1, %s495_s28 }
  0x2d   : > { %p502_p11 = scmp.lt.u32.totalorder %s495_s28, %s806_s1 }
  0x2e   : > { %s814_s20 = scalar_select %p719_p3, 1, 0 }
  0x2f   : > { %p498_p6 = pnand %p496_p4, %p469_p1 }
  0x31   : > { %p499_p8 = pneg %p498_p6 }
  0x33   : > { %p504_p13 = pnand %p502_p11, %p499_p8 }
  0x35   : > { %507 = shalt.err (!%p504_p13)
}
  0x36   : > { %s508_s4 = scalar_lea.vmem %s170_s27, 128  ;;  %s515_s5 = scalar_lea.vmem %s170_s27, 256 }
  0x37   : > { %p509_p5 = scmp.ne.s32.totalorder %s170_s27, %s508_s4  ;;  %p516_p10 = scmp.lt.s32.totalorder %s170_s27, %s170_s27 }
  0x38   : > { %p517_p0 = scmp.lt.s32.totalorder %s515_s5, %s508_s4 }
  0x39   : > { %p511_p7 = pnand %p509_p5, %p469_p1 }
  0x3a   : > { %p518_p2 = por %p517_p0, %p516_p10 }
  0x3b   : > { %p512_p9 = pneg %p511_p7 }
  0x3d   : > { %p519_p3 = pnand %p518_p2, %p512_p9 }
  0x3f   : > { %522 = shalt.err (!%p519_p3)
}
  0x40   : > { %402 = dma.hbm_to_vmem [thread:$0]  (!%p688_p12), %s806_s1, 128, %s170_s27, [#allocation6]  }
  0x41   : > { %p815_p4 = scmp.ne.s32.totalorder %s814_s20, 0 }
  0x42   : > { %p410_p6 = scmp.eq.s32.totalorder (!%p815_p4), %s370_s15, 0 }
  0x43   : > { %178 = sbr.rel (%p815_p4) target bundleno = 432 (0x1b0), region = 28 }
  0x4a   : > { %576 = dma.done.wait (%p410_p6), [#allocation3], 128  }
  0x4b   : > { %578 = vsyncadd (%p410_p6), [#allocation3], 4294967168 }
  0x4c   : > { %580 = dma.done.wait (%p410_p6), [#allocation6], 128  }
  0x4d   : > { %582 = vsyncadd (%p410_p6), [#allocation6], 4294967168  ;;  %s216_s8 = sand.u32 1, %s593_s10   ;;  %p380_p1 = scmp.ne.s32.totalorder %s601_s12, 0 }
  0x4e   : > { %s379_s16 = sshll.u32 %s216_s8, 3  ;;  %v227_v0 = vld [vmem:[#allocation2] sm:$0xff] (!%p380_p1)  ;;  %vm229_vm0 = vcmask (!%p380_p1), 261120  }
  0x4f   : > { %s750_s25 = scalar_lea.vmem [#allocation7], %s379_s16  ;;  %226 = sbr.rel (%p380_p1) target bundleno = 242 (0xf2), region = 40  ;;  %v228_v1 = vmul.f32 (!%p380_p1), %v227_v0, %v227_v0 }
  0x51   : > { %v230_v2 = vsel (!%p380_p1), %vm229_vm0, %v228_v1, 0.0 }
  0x52   : > { %231 = vadd.xlane.f32.xlu0 (!%p380_p1), %v230_v2 }
  0xdf   : > { %v232_v3 = vpop.xlane.xlu0 %231 }
  0xe0   : > { %v233_v4 = vmax.f32 %v232_v3, 1e-24 }
  0xe2   : > { %463 = vrsqrt.f32 %v233_v4 }
  0xec   : > { %v464_v5 = vpop.eup %463 }
  0xed   : > { %v235_v6 = vmul.f32 1.4142135, %v464_v5 }
  0xef   : > { %v236_v7 = vmul.f32 %v235_v6, %v227_v0 }
  0xf1   : > { %237 = vst.msk [vmem:[%s750_s25] sm:$0xff] %vm229_vm0, %v236_v7 }
  0xf2 PF: > { %p381_p12 = scmp.ne.s32.totalorder %s601_s12, 1 }
  0xf3   : > { %v242_v8 = vld [vmem:[#allocation5] sm:$0xff] (!%p381_p12)  ;;  %vm244_vm1 = vcmask (!%p381_p12), 261120  }
  0xf4   : > { %241 = sbr.rel (%p381_p12) target bundleno = 407 (0x197), region = 44  ;;  %v243_v9 = vmul.f32 (!%p381_p12), %v242_v8, %v242_v8 }
  0xf6   : > { %v245_v10 = vsel (!%p381_p12), %vm244_vm1, %v243_v9, 0.0 }
  0xf7   : > { %246 = vadd.xlane.f32.xlu0 (!%p381_p12), %v245_v10 }
 0x184   : > { %v247_v11 = vpop.xlane.xlu0 %246 }
 0x185   : > { %v248_v12 = vmax.f32 %v247_v11, 1e-24 }
 0x187   : > { %465 = vrsqrt.f32 %v248_v12 }
 0x191   : > { %v466_v13 = vpop.eup %465 }
 0x192   : > { %v250_v14 = vmul.f32 1.4142135, %v466_v13 }
 0x194   : > { %v251_v15 = vmul.f32 %v250_v14, %v242_v8 }
 0x196   : > { %252 = vst.msk [vmem:[%s750_s25] sm:$0xff] %vm244_vm1, %v251_v15 }
 0x197 PF: > { %s383_s15 = sshll.u32 %s601_s12, 7  ;;  %s268_s23 = sshll.u32 %s750_s25, 4  ;;  %s269_s23 = int_to_ptr.vmem [resolvable:$true] %s268_s23 }
 0x198   : > { %s760_s20 = scalar_lea.hbm %s807_s2, %s383_s15  ;;  %s254_s26 = scalar_lea.sflag [#allocation4], %s216_s8 }
 0x199   : > { %s523_s28 = scalar_lea.vmem %s269_s23, 128  ;;  %p816_p8 = scmp.ne.s32.totalorder %s809_s19, 0 }
 0x19a   : > { %p524_p3 = scmp.ne.s32.totalorder %s269_s23, %s523_s28  ;;  %s613_s29 = smov [#allocation7]  }
 0x19b   : > { %s527_s30 = sshll.u32 %s613_s29, 4  ;;  %s528_s30 = int_to_ptr.vmem [resolvable:$false] %s527_s30 }
 0x19c   : > { %p525_p11 = pnand %p524_p3, %p816_p8  ;;  %s529_s24 = scalar_lea.vmem %s528_s30, 256 }
 0x19d   : > { %p530_p5 = scmp.lt.s32.totalorder %s269_s23, %s528_s30  ;;  %p531_p7 = scmp.lt.s32.totalorder %s529_s24, %s523_s28 }
 0x19e   : > { %p526_p13 = pneg %p525_p11 }
 0x19f   : > { %p532_p9 = por %p531_p7, %p530_p5 }
 0x1a1   : > { %p533_p10 = pnand %p532_p9, %p526_p13 }
 0x1a3   : > { %536 = shalt.err (!%p533_p10)
}
 0x1a4   : > { %s537_s12 = scalar_lea.hbm %s760_s20, 128  ;;  %s541_s5 = scalar_lea.hbm %s807_s2, 256 }
 0x1a5   : > { %p538_p0 = scmp.ne.s32.totalorder %s760_s20, %s537_s12  ;;  %p542_p6 = scmp.lt.u32.totalorder %s760_s20, %s807_s2 }
 0x1a6   : > { %p543_p1 = scmp.lt.u32.totalorder %s541_s5, %s537_s12  ;;  %p545_p3 = scmp.lt.u32.totalorder %s537_s12, %s760_s20 }
 0x1a7   : > { %p539_p2 = pnand %p538_p0, %p816_p8 }
 0x1a8   : > { %p544_p12 = por %p543_p1, %p542_p6 }
 0x1a9   : > { %p540_p4 = pneg %p539_p2 }
 0x1aa   : > { %p546_p11 = por %p545_p3, %p544_p12 }
 0x1ac   : > { %p547_p13 = pnand %p546_p11, %p540_p4 }
 0x1ae   : > { %550 = shalt.err (!%p547_p13)
}
 0x1af   : > { %394 = dma.vmem_to_hbm [thread:$0]  (%p816_p8), %s269_s23, 128, %s760_s20, %s254_s26  }
 0x1b0 PF: > { %s280_s8 = sand.u32 1, %s589_s9   ;;  %p817_p5 = scmp.ne.s32.totalorder %s810_s21, 0 }
 0x1b1   : > { %p818_p7 = scmp.ge.s32.totalorder %s609_s14, 2  ;;  %s281_s16 = scalar_lea.sflag [#allocation4], %s280_s8 }
 0x1b3   : > { %p404_p9 = pnand %p818_p7, %p817_p5 }
 0x1b5   : > { %584 = dma.done.wait (!%p404_p9), %s281_s16, 128  }
 0x1b6   : > { %586 = vsyncadd (!%p404_p9), %s281_s16, 4294967168  ;;  %s21_s14 = sadd.s32 1, %s609_s14   ;;  %s819_s9 = smov %s593_s10 }
 0x1b7   : > { %p18_p10 = scmp.ge.s32.totalorder %s21_s14, 4   ;;  %s820_s10 = smov %s597_s11 }
 0x1b8   : > { %s821_s11 = smov %s684_s22  ;;  %s822_s12 = smov %s605_s13 }
 0x1b9   : > { %s823_s13 = smov %s825_s17  ;;  %20 = sbr.rel (!%p18_p10) target bundleno = 8 (0x8), region = 94 }
 0x1c0   :  { %286 = vsyncpa [#allocation3], 1 }
 0x1c1   :  { %288 = vsyncpa [#allocation3 + $0x1], 1 }
 0x1c2   :  { %289 = vsyncpa [#allocation6], 1 }
 0x1c3   :  { %291 = vsyncpa [#allocation6 + $0x1], 1 }
 0x1c4   :  { %292 = vsyncpa [#allocation4], 1 }
 0x1c5   :  { %294 = vsyncpa [#allocation4 + $0x1], 1 }

</bundles_post_ra>
